<compile_context>
chip_gen: v5e
topology: v5e:2x2
jax: 0.10.0
libtpu: 0.0.40
codegen_flags: <defaults>
</compile_context>

<pallas_src>
import functools
import math

import jax
import jax.numpy as jnp
from jax.experimental import pallas as pl
from jax.experimental.pallas import tpu as pltpu


# ------------------------------ small helpers -------------------------------

def _round_up(x, m):
    return ((x + m - 1) // m) * m


def _clamp_vmem(nbytes):
    # explicit per-kernel scoped-VMEM limit with headroom; stays well below
    # v7x's 64 MiB physical VMEM per TensorCore.
    return int(min(max(nbytes, 16 * 1024 * 1024), 48 * 1024 * 1024))


def _pick_tile(dim, target):
    """Tile that divides `dim` exactly when possible (avoids padding)."""
    if dim <= target:
        return dim
    for t in (target, 256, 128):
        if dim % t == 0:
            return t
    return target


_TM, _TN = 512, 512   # 128-aligned, sized for v6e/v7x VMEM; fine on v5e too.


# ------------------------------ Pallas kernels ------------------------------

def _linear_kernel(x_ref, w_ref, b_ref, o_ref, *, activation):
    """y = x @ W + b (optional GELU). bf16 operands, fp32 accumulate, full K."""
    y = jnp.dot(x_ref[...], w_ref[...], preferred_element_type=jnp.float32)
    y = y + b_ref[...]
    if activation == "gelu":
        # TODO(synk): tanh-approx GELU (HF "gelu_new"); stock BERT default is
        # the exact erf form -- tiny numerical difference.
        c = math.sqrt(2.0 / math.pi)
        y = 0.5 * y * (1.0 + jnp.tanh(c * (y + 0.044715 * y * y * y)))
    o_ref[...] = y.astype(o_ref.dtype)


def _ln_math(x, g, b):
    mean = jnp.mean(x, axis=-1, keepdims=True)
    var = jnp.mean(jnp.square(x - mean), axis=-1, keepdims=True)
    inv = jax.lax.rsqrt(var + 1e-12)            # BERT eps
    return (x - mean) * inv * g + b


def _linear_res_ln_kernel(x_ref, w_ref, b_ref, r_ref, g_ref, bt_ref, o_ref):
    """y = LayerNorm(x @ W + b + residual): projection + residual + LN fused."""
    y = jnp.dot(x_ref[...], w_ref[...], preferred_element_type=jnp.float32)
    y = y + b_ref[...] + r_ref[...].astype(jnp.float32)
    o_ref[...] = _ln_math(y, g_ref[...], bt_ref[...]).astype(o_ref.dtype)


def _layernorm_kernel(x_ref, g_ref, b_ref, o_ref):
    x = x_ref[...].astype(jnp.float32)
    o_ref[...] = _ln_math(x, g_ref[...], b_ref[...]).astype(o_ref.dtype)


def _attention_kernel(x_ref, wq_ref, wk_ref, wv_ref, bq_ref, bk_ref, bv_ref,
                      bias_ref, o_ref):
    """One (batch, head): fused per-head QKV projection + softmax attention.

    x_ref block:  (1, S, H)  bf16 hidden states
    w*_ref block: (1, H, dh) bf16 per-head projection (Q already pre-scaled)
    b*_ref block: (1, 1, dh) fp32
    bias_ref:     (1, S)     fp32 additive key mask
    o_ref block:  (1, 1, S, dh) bf16 head-major context (lane-dense, full dh)
    """
    x = x_ref[0]                                                    # (S, H) bf16
    q = jnp.dot(x, wq_ref[0], preferred_element_type=jnp.float32) + bq_ref[0]
    k = jnp.dot(x, wk_ref[0], preferred_element_type=jnp.float32) + bk_ref[0]
    v = jnp.dot(x, wv_ref[0], preferred_element_type=jnp.float32) + bv_ref[0]
    # contract on last dims -> no explicit transpose of K.
    s = jax.lax.dot_general(q.astype(jnp.bfloat16), k.astype(jnp.bfloat16),
                            (((1,), (1,)), ((), ())),
                            preferred_element_type=jnp.float32)     # (S, S)
    s = s + bias_ref[...]                       # fp32 -1e9 key mask, row bcast
    s = s - jnp.max(s, axis=-1, keepdims=True)
    p = jnp.exp(s)
    p = p * pl.reciprocal(jnp.sum(p, axis=-1, keepdims=True), approx=True)
    ctx = jnp.dot(p.astype(jnp.bfloat16), v.astype(jnp.bfloat16),
                  preferred_element_type=jnp.float32)               # (S, dh)
    o_ref[0, 0] = ctx.astype(o_ref.dtype)


# ------------------------------ kernel wrappers ------------------------------

def linear(x, w, b, activation=None, out_dtype=jnp.bfloat16):
    """x: [M, K] bf16, w: [K, N] bf16, b: [N] f32 -> [M, N] out_dtype."""
    M, K = x.shape
    N = w.shape[1]
    tm = _pick_tile(M, _TM)
    tn = _pick_tile(N, _TN)
    Mp, Np = _round_up(M, tm), _round_up(N, tn)
    if Mp != M:
        x = jnp.pad(x, ((0, Mp - M), (0, 0)))
    if Np != N:                                    # weights pre-padded at init;
        w = jnp.pad(w, ((0, 0), (0, Np - N)))      # fallback only
        b = jnp.pad(b, (0, Np - N))
    b2 = b.reshape(1, Np)

    osz = jnp.dtype(out_dtype).itemsize
    need = 2 * (tm * K * 2 + K * tn * 2 + tn * 4 + tm * tn * osz) \
        + tm * tn * 4 + (4 << 20)
    out = pl.pallas_call(
        functools.partial(_linear_kernel, activation=activation),
        out_shape=jax.ShapeDtypeStruct((Mp, Np), out_dtype),
        grid=(Mp // tm, Np // tn),
        in_specs=[
            pl.BlockSpec((tm, K), lambda i, j: (i, 0)),
            pl.BlockSpec((K, tn), lambda i, j: (0, j)),
            pl.BlockSpec((1, tn), lambda i, j: (0, j)),
        ],
        out_specs=pl.BlockSpec((tm, tn), lambda i, j: (i, j)),
        compiler_params=pltpu.CompilerParams(
            dimension_semantics=("parallel", "parallel"),
            vmem_limit_bytes=_clamp_vmem(need)),
    )(x, w, b2)
    if (Mp, Np) != (M, N):
        out = out[:M, :N]
    return out


def linear_res_ln(x, w, b, residual, gamma, beta):
    """LayerNorm(x @ W + b + residual): full-N tile so LN sees whole rows."""
    M, K = x.shape
    N = w.shape[1]
    tm = _pick_tile(M, _TM)
    Mp = _round_up(M, tm)
    if Mp != M:
        x = jnp.pad(x, ((0, Mp - M), (0, 0)))
        residual = jnp.pad(residual, ((0, Mp - M), (0, 0)))

    need = 2 * (tm * K * 2 + K * N * 2 + N * 4 + tm * N * 2 + tm * N * 2
                + 2 * N * 4) + tm * N * 4 + (4 << 20)
    out = pl.pallas_call(
        _linear_res_ln_kernel,
        out_shape=jax.ShapeDtypeStruct((Mp, N), jnp.bfloat16),
        grid=(Mp // tm,),
        in_specs=[
            pl.BlockSpec((tm, K), lambda i: (i, 0)),
            pl.BlockSpec((K, N), lambda i: (0, 0)),
            pl.BlockSpec((1, N), lambda i: (0, 0)),
            pl.BlockSpec((tm, N), lambda i: (i, 0)),
            pl.BlockSpec((1, N), lambda i: (0, 0)),
            pl.BlockSpec((1, N), lambda i: (0, 0)),
        ],
        out_specs=pl.BlockSpec((tm, N), lambda i: (i, 0)),
        compiler_params=pltpu.CompilerParams(
            dimension_semantics=("parallel",),
            vmem_limit_bytes=_clamp_vmem(need)),
    )(x, w, b.reshape(1, N), residual, gamma.reshape(1, N), beta.reshape(1, N))
    return out[:M] if Mp != M else out


def layernorm(x, gamma, beta):
    """x: [M, H] (any float dtype) -> LayerNorm(x) as bf16."""
    M, H = x.shape
    tm = _pick_tile(M, _TM)
    Mp = _round_up(M, tm)
    if Mp != M:
        x = jnp.pad(x, ((0, Mp - M), (0, 0)))
    need = 2 * (tm * H * 4 + 2 * H * 4 + tm * H * 2) + (4 << 20)
    out = pl.pallas_call(
        _layernorm_kernel,
        out_shape=jax.ShapeDtypeStruct((Mp, H), jnp.bfloat16),
        grid=(Mp // tm,),
        in_specs=[
            pl.BlockSpec((tm, H), lambda i: (i, 0)),
            pl.BlockSpec((1, H), lambda i: (0, 0)),
            pl.BlockSpec((1, H), lambda i: (0, 0)),
        ],
        out_specs=pl.BlockSpec((tm, H), lambda i: (i, 0)),
        compiler_params=pltpu.CompilerParams(
            dimension_semantics=("parallel",),
            vmem_limit_bytes=_clamp_vmem(need)),
    )(x, gamma.reshape(1, H), beta.reshape(1, H))
    return out[:M] if Mp != M else out


def attention(h3d, key_bias, wq, wk, wv, bq, bk, bv):
    """h3d: [B, S, H] bf16, key_bias: [B, S] f32 -> context [B, nh, S, dh] bf16."""
    B, S, H = h3d.shape
    nh, _, dh = wq.shape
    need = 2 * (S * H * 2 + 3 * H * dh * 2 + 3 * dh * 4 + S * 4 + S * dh * 2) \
        + (S * S * 4 + 3 * S * dh * 4) + (4 << 20)
    return pl.pallas_call(
        _attention_kernel,
        out_shape=jax.ShapeDtypeStruct((B, nh, S, dh), jnp.bfloat16),
        grid=(B, nh),
        in_specs=[
            pl.BlockSpec((1, S, H), lambda b, h: (b, 0, 0)),
            pl.BlockSpec((1, H, dh), lambda b, h: (h, 0, 0)),
            pl.BlockSpec((1, H, dh), lambda b, h: (h, 0, 0)),
            pl.BlockSpec((1, H, dh), lambda b, h: (h, 0, 0)),
            pl.BlockSpec((1, 1, dh), lambda b, h: (h, 0, 0)),
            pl.BlockSpec((1, 1, dh), lambda b, h: (h, 0, 0)),
            pl.BlockSpec((1, 1, dh), lambda b, h: (h, 0, 0)),
            pl.BlockSpec((1, S), lambda b, h: (b, 0)),
        ],
        out_specs=pl.BlockSpec((1, 1, S, dh), lambda b, h: (b, h, 0, 0)),
        compiler_params=pltpu.CompilerParams(
            dimension_semantics=("parallel", "parallel"),
            vmem_limit_bytes=_clamp_vmem(need)),
    )(h3d, wq, wk, wv, bq, bk, bv, key_bias)


# --------------------------- Model (glue in JAX) -----------------------------

def encoder_layer(h2d, key_bias, p, B, S):
    """One BERT encoder layer.  h2d: [B*S, H] bf16, key_bias: [B, S] f32."""
    H = h2d.shape[1]
    ctx = attention(h2d.reshape(B, S, H), key_bias,
                    p["wq"], p["wk"], p["wv"], p["bq"], p["bk"], p["bv"])
    # head-merge relayout kept as XLA glue (one bf16 pass); O-proj + residual
    # + LayerNorm are fused into a single Pallas kernel below.
    ctx2d = jnp.transpose(ctx, (0, 2, 1, 3)).reshape(B * S, H)
    h1 = linear_res_ln(ctx2d, p["o_w"], p["o_b"], h2d, p["ln1_g"], p["ln1_b"])

    ffn = linear(h1, p["i_w"], p["i_b"], activation="gelu")
    h2 = linear_res_ln(ffn, p["f_w"], p["f_b"], h1, p["ln2_g"], p["ln2_b"])
    return h2


def torch_model_forward(x, params):
    """Equivalent of TorchModel.forward(x) with target=None, use_crf=False."""
    B, S = x.shape
    H = params["word_emb"].shape[1]
    class_num = params["class_num"]

    # attention_mask = (x != 0).float()  -> additive key bias
    attn_mask = (x != 0).astype(jnp.float32)            # [B, S]
    key_bias = (1.0 - attn_mask) * -1e9

    # BERT embeddings (gather is glue), LayerNorm in Pallas (-> bf16 activations).
    h = (params["word_emb"][x]
         + params["pos_emb"][:S][None, :, :]
         + params["type_emb"][0][None, None, :])
    h2d = layernorm(h.reshape(B * S, H), params["emb_ln_g"], params["emb_ln_b"])

    for layer_params in params["layers"]:
        h2d = encoder_layer(h2d, key_bias, layer_params, B, S)

    # self.dropout: eval mode -> identity.
    # predict = self.classify(sequence_output); classifier pre-padded to 128 lanes.
    logits = linear(h2d, params["cls_w"], params["cls_b"],
                    out_dtype=jnp.float32)[:, :class_num]
    return logits.reshape(B, S, class_num)
    # TODO(synk): CRF decode/loss (use_crf=True branch) is a sequential Viterbi/
    # forward pass with no clean Pallas equivalent; use_crf=False path only.


# ------------------------------- Param init ----------------------------------

def init_params(key, *, vocab, max_pos, hidden, num_heads, intermediate,
                num_layers, class_num):
    """Device-ready params: bf16 weights, head-major QKV (Q pre-scaled),
    classifier pre-padded to a lane-dense multiple of 128 columns."""
    dh = hidden // num_heads
    scale = 1.0 / math.sqrt(dh)

    def normal(k, shape):
        return 0.02 * jax.random.normal(k, shape, dtype=jnp.float32)

    def head_major(w):        # [H, H] -> [nh, H, dh]
        return jnp.transpose(w.reshape(hidden, num_heads, dh), (1, 0, 2))

    keys = jax.random.split(key, 5 + num_layers)
    params = {
        "class_num": class_num,
        "word_emb": normal(keys[0], (vocab, hidden)),
        "pos_emb": normal(keys[1], (max_pos, hidden)),
        "type_emb": normal(keys[2], (2, hidden)),
        "emb_ln_g": jnp.ones((hidden,), jnp.float32),
        "emb_ln_b": jnp.zeros((hidden,), jnp.float32),
        "layers": [],
    }
    for li in range(num_layers):
        lk = jax.random.split(keys[5 + li], 6)
        q_w, k_w, v_w = (normal(lk[i], (hidden, hidden)) for i in range(3))
        params["layers"].append({
            # 1/sqrt(dh) baked into Q weight/bias so the kernel never scales scores.
            "wq": (head_major(q_w) * scale).astype(jnp.bfloat16),
            "wk": head_major(k_w).astype(jnp.bfloat16),
            "wv": head_major(v_w).astype(jnp.bfloat16),
            "bq": jnp.zeros((num_heads, 1, dh), jnp.float32),
            "bk": jnp.zeros((num_heads, 1, dh), jnp.float32),
            "bv": jnp.zeros((num_heads, 1, dh), jnp.float32),
            "o_w": normal(lk[3], (hidden, hidden)).astype(jnp.bfloat16),
            "o_b": jnp.zeros((hidden,), jnp.float32),
            "ln1_g": jnp.ones((hidden,), jnp.float32),
            "ln1_b": jnp.zeros((hidden,), jnp.float32),
            "i_w": normal(lk[4], (hidden, intermediate)).astype(jnp.bfloat16),
            "i_b": jnp.zeros((intermediate,), jnp.float32),
            "f_w": normal(lk[5], (intermediate, hidden)).astype(jnp.bfloat16),
            "f_b": jnp.zeros((hidden,), jnp.float32),
            "ln2_g": jnp.ones((hidden,), jnp.float32),
            "ln2_b": jnp.zeros((hidden,), jnp.float32),
        })
    # classifier padded once, at init, to a lane-dense multiple of 128 columns.
    cpad = _round_up(class_num, 128)
    cls_w = normal(keys[3], (hidden, class_num))
    params["cls_w"] = jnp.pad(cls_w, ((0, 0), (0, cpad - class_num))).astype(jnp.bfloat16)
    params["cls_b"] = jnp.zeros((cpad,), jnp.float32)
    return params


# ---------------------------------- Main --------------------------------------

if __name__ == "__main__":
    B, S = 2, 8
    VOCAB, MAX_POS, HIDDEN, HEADS, INTER, LAYERS = 30, 16, 32, 2, 64, 2
    CLASS_NUM = 9

    root = jax.random.PRNGKey(0)
    k_param, k_tok = jax.random.split(root)

    params = init_params(k_param, vocab=VOCAB, max_pos=MAX_POS, hidden=HIDDEN,
                         num_heads=HEADS, intermediate=INTER,
                         num_layers=LAYERS, class_num=CLASS_NUM)

    # token ids; include some zeros (padding) so the attention mask is exercised
    x = jax.random.randint(k_tok, (B, S), 0, VOCAB, dtype=jnp.int32)
    x = x.at[:, -2:].set(0)   # trailing padding tokens

    logits = torch_model_forward(x, params)
    jax.block_until_ready(logits)

    assert logits.shape == (B, S, CLASS_NUM)
    assert logits.dtype == jnp.float32
    assert bool(jnp.all(jnp.isfinite(logits)))
    print("KERNEL_OK")
</pallas_src>

<mosaic_0001>
module attributes {stable_mosaic.version = 11 : i64} {
  func.func @_layernorm_kernel(%arg0: i32, %arg1: memref<16x32xf32, #tpu.memory_space<vmem>>, %arg2: memref<1x32xf32, #tpu.memory_space<vmem>>, %arg3: memref<1x32xf32, #tpu.memory_space<vmem>>, %arg4: memref<16x32xbf16, #tpu.memory_space<vmem>>) attributes {dimension_semantics = [#tpu.dimension_semantics<parallel>], iteration_bounds = array<i64: 1>, scalar_prefetch = 0 : i64, scratch_operands = 0 : i64, tpu.core_type = #tpu.core_type<tc>, window_params = [{transform_indices = @transform_0, window_bounds = array<i64: 16, 32>}, {pipeline_mode = #tpu.pipeline_mode<synchronous>, transform_indices = @transform_1, window_bounds = array<i64: 1, 32>}, {pipeline_mode = #tpu.pipeline_mode<synchronous>, transform_indices = @transform_2, window_bounds = array<i64: 1, 32>}, {transform_indices = @transform_3, window_bounds = array<i64: 16, 32>}]} {
    %c0 = arith.constant 0 : index
    %c0_0 = arith.constant 0 : index
    %0 = vector.load %arg1[%c0, %c0_0] : memref<16x32xf32, #tpu.memory_space<vmem>>, vector<16x32xf32>
    %c0_1 = arith.constant 0 : index
    %c0_2 = arith.constant 0 : index
    %1 = vector.load %arg2[%c0_1, %c0_2] : memref<1x32xf32, #tpu.memory_space<vmem>>, vector<1x32xf32>
    %c0_3 = arith.constant 0 : index
    %c0_4 = arith.constant 0 : index
    %2 = vector.load %arg3[%c0_3, %c0_4] : memref<1x32xf32, #tpu.memory_space<vmem>>, vector<1x32xf32>
    %cst = arith.constant dense<0.000000e+00> : vector<16xf32>
    %3 = vector.multi_reduction <add>, %0, %cst [1] : vector<16x32xf32> to vector<16xf32>
    %4 = vector.shape_cast %3 : vector<16xf32> to vector<16x1xf32>
    %cst_5 = arith.constant 3.200000e+01 : f32
    %5 = vector.broadcast %cst_5 : f32 to vector<16x1xf32>
    %6 = arith.divf %4, %5 : vector<16x1xf32>
    %7 = vector.broadcast %6 : vector<16x1xf32> to vector<16x32xf32>
    %8 = arith.subf %0, %7 : vector<16x32xf32>
    %9 = arith.mulf %8, %8 : vector<16x32xf32>
    %cst_6 = arith.constant dense<0.000000e+00> : vector<16xf32>
    %10 = vector.multi_reduction <add>, %9, %cst_6 [1] : vector<16x32xf32> to vector<16xf32>
    %11 = vector.shape_cast %10 : vector<16xf32> to vector<16x1xf32>
    %cst_7 = arith.constant 3.200000e+01 : f32
    %12 = vector.broadcast %cst_7 : f32 to vector<16x1xf32>
    %13 = arith.divf %11, %12 : vector<16x1xf32>
    %cst_8 = arith.constant 9.99999996E-13 : f32
    %14 = vector.broadcast %cst_8 : f32 to vector<16x1xf32>
    %15 = arith.addf %13, %14 : vector<16x1xf32>
    %16 = math.rsqrt %15 : vector<16x1xf32>
    %17 = vector.broadcast %6 : vector<16x1xf32> to vector<16x32xf32>
    %18 = arith.subf %0, %17 : vector<16x32xf32>
    %19 = vector.broadcast %16 : vector<16x1xf32> to vector<16x32xf32>
    %20 = arith.mulf %18, %19 : vector<16x32xf32>
    %21 = vector.broadcast %1 : vector<1x32xf32> to vector<16x32xf32>
    %22 = arith.mulf %20, %21 : vector<16x32xf32>
    %23 = vector.broadcast %2 : vector<1x32xf32> to vector<16x32xf32>
    %24 = arith.addf %22, %23 : vector<16x32xf32>
    %25 = arith.truncf %24 : vector<16x32xf32> to vector<16x32xbf16>
    %c0_9 = arith.constant 0 : index
    %c0_10 = arith.constant 0 : index
    %26 = vector.load %arg4[%c0_9, %c0_10] : memref<16x32xbf16, #tpu.memory_space<vmem>>, vector<16x32xbf16>
    tpu.vector_store %arg4[%c0_9, %c0_10], %25 {strides = array<i32>} : memref<16x32xbf16, #tpu.memory_space<vmem>>, vector<16x32xbf16>,
    return
  }
  func.func @transform_0(%arg0: i32) -> (i32, i32) {
    %c0_i32 = arith.constant 0 : i32
    %c0_i32_0 = arith.constant 0 : i32
    return %arg0, %c0_i32 : i32, i32
  }
  func.func @transform_1(%arg0: i32) -> (i32, i32) {
    %c0_i32 = arith.constant 0 : i32
    %c0_i32_0 = arith.constant 0 : i32
    %c0_i32_1 = arith.constant 0 : i32
    return %c0_i32, %c0_i32_0 : i32, i32
  }
  func.func @transform_2(%arg0: i32) -> (i32, i32) {
    %c0_i32 = arith.constant 0 : i32
    %c0_i32_0 = arith.constant 0 : i32
    %c0_i32_1 = arith.constant 0 : i32
    return %c0_i32, %c0_i32_0 : i32, i32
  }
  func.func @transform_3(%arg0: i32) -> (i32, i32) {
    %c0_i32 = arith.constant 0 : i32
    %c0_i32_0 = arith.constant 0 : i32
    return %arg0, %c0_i32 : i32, i32
  }
}

</mosaic_0001>

<bundles_post_ra>
// kernel: tpu_custom_call.1
= control target key start
LH: loop header
LB: loop body
LE: loop exit
PB: predicated region body
PF: predicated region fallthrough
CT: control target
= control target key end

     0   :  { %8 = vsyncpa [#allocation3], 0  ;;  %s274_s0 = inlined_call_operand.hbm [shape: f32[16,32], index: 0, kind: input, shape index: {}]   ;;  %s275_s1 = inlined_call_operand.hbm [shape: f32[1,32], index: 1, kind: input, shape index: {}]   ;;  %s276_s2 = inlined_call_operand.vmem [shape: f32[1,32], index: 2, kind: input, shape index: {}]   ;;  %s277_s3 = inlined_call_operand.hbm [shape: bf16[16,32], index: 3, kind: output, shape index: {}]  }
   0x1   :  { %9 = vsyncpa [#allocation6], 0 }
   0x2   :  { %10 = vsyncpa [#allocation4], 0  ;;  %s15_s14 = sshll.u32 %s274_s0, 4  ;;  %s230_s15 = smov [#allocation2]   ;;  %s16_s14 = int_to_ptr.hbm [resolvable:$true] %s15_s14 }
   0x3   :  { %s17_s16 = sshll.u32 %s230_s15, 4  ;;  %s29_s19 = sshll.u32 %s275_s1, 4  ;;  %s18_s16 = int_to_ptr.vmem [resolvable:$true] %s17_s16  ;;  %s30_s19 = int_to_ptr.hbm [resolvable:$true] %s29_s19 }
   0x4   :  { %s231_s20 = smov 128   ;;  %s232_s21 = smov 8  }
   0x5   :  { %23 = dma.hbm_to_vmem [thread:$0]  %s16_s14, 256, %s18_s16, [#allocation3], %s231_s20, %s231_s20, %s232_s21  }
   0x6   :  { %s233_s22 = smov [#allocation5]  }
   0x7   :  { %s31_s23 = sshll.u32 %s233_s22, 4  ;;  %s32_s23 = int_to_ptr.vmem [resolvable:$true] %s31_s23 }
   0x8   :  { %34 = dma.hbm_to_vmem [thread:$0]  %s30_s19, 16, %s32_s23, [#allocation6]  }
   0x9   :  { %224 = dma.done.wait [#allocation3], 256  }
   0xa   :  { %225 = vsyncadd [#allocation3], 4294967040 }
   0xb   :  { %226 = dma.done.wait [#allocation6], 16  }
   0xc   :  { %227 = vsyncadd [#allocation6], 4294967280  ;;  %vm49_vm0 = vcmask 261120   ;;  %v45_v0 = vld [vmem:[#allocation2] sm:$0xff]  ;;  %v46_v2 = vld [vmem:[#allocation2 + $0x8] sm:$0xff]  ;;  %v234_v4 = vmov 32.0  }
   0xd   :  { %v50_v1 = vsel %vm49_vm0, %v45_v0, 0.0  ;;  %v53_v3 = vsel %vm49_vm0, %v46_v2, 0.0  ;;  %146 = vrcp.f32 %v234_v4  ;;  %v144_v35 = vld [vmem:[#allocation5] ss:$0 sm:$0xff]  ;;  %v145_v38 = vld [vmem:[%s276_s2] ss:$0 sm:$0xff] }
   0xe   :  { %51 = vadd.xlane.f32.xlu0 %v50_v1  ;;  %vm113_vm7 = vcmask 257024   ;;  %s235_s24 = smov [#allocation7]   ;;  %s122_s2 = sshll.u32 %s277_s3, 4  ;;  %s123_s2 = int_to_ptr.hbm [resolvable:$true] %s122_s2 }
   0xf   :  { %s120_s25 = sshll.u32 %s235_s24, 4  ;;  %s236_s28 = smov 64   ;;  %s121_s25 = int_to_ptr.vmem [resolvable:$true] %s120_s25 }
  0x10   :  { %s237_s29 = smov 4  }
  0x13   :  { %v147_v5 = vpop.eup %146 }
  0x14   :  { %v57_v6 = vmul.f32 32.0, %v147_v5  ;;  %vm61_vm1 = vweird.f32 %v147_v5 }
  0x16   :  { %54 = vadd.xlane.f32.xlu0 %v53_v3  ;;  %v58_v7 = vsub.f32 1.0, %v57_v6 }
  0x18   :  { %v59_v8 = vmul.f32 %v147_v5, %v58_v7 }
  0x1a   :  { %v60_v9 = vadd.f32 %v147_v5, %v59_v8 }
  0x1c   :  { %v62_v10 = vsel %vm61_vm1, %v147_v5, %v60_v9 }
  0x81   :  { %v52_v11 = vpop.xlane.xlu0 %51 }
  0x82   :  { %v63_v12 = vmul.f32 %v62_v10, %v52_v11 }
  0x84   :  { %v65_v13 = vsub.f32 %v45_v0, %v63_v12 }
  0x86   :  { %v67_v14 = vmul.f32 %v65_v13, %v65_v13 }
  0x88   :  { %v69_v15 = vsel %vm49_vm0, %v67_v14, 0.0 }
  0x89   :  { %70 = vadd.xlane.f32.xlu1 %v69_v15  ;;  %v55_v16 = vpop.xlane.xlu0 %54 }
  0x8a   :  { %v64_v17 = vmul.f32 %v62_v10, %v55_v16 }
  0x8c   :  { %v66_v18 = vsub.f32 %v46_v2, %v64_v17 }
  0x8e   :  { %v68_v19 = vmul.f32 %v66_v18, %v66_v18 }
  0x90   :  { %v72_v20 = vsel %vm49_vm0, %v68_v19, 0.0 }
  0x91   :  { %73 = vadd.xlane.f32.xlu1 %v72_v20 }
  0xfc   :  { %v71_v21 = vpop.xlane.xlu1 %70 }
  0xfd   :  { %v75_v22 = vmul.f32 %v71_v21, %v62_v10 }
  0xff   :  { %v77_v23 = vadd.f32 1e-12, %v75_v22 }
 0x101   :  { %148 = vrsqrt.f32 %v77_v23  ;;  %vm85_vm3 = vweird.f32 %v77_v23 }
 0x104   :  { %v74_v24 = vpop.xlane.xlu1 %73 }
 0x105   :  { %v76_v25 = vmul.f32 %v74_v24, %v62_v10 }
 0x107   :  { %v149_v26 = vpop.eup %148  ;;  %v78_v27 = vadd.f32 1e-12, %v76_v25 }
 0x108   :  { %v80_v28 = vmul.f32 %v149_v26, %v77_v23  ;;  %vm86_vm2 = vweird.f32 %v149_v26 }
 0x109   :  { %150 = vrsqrt.f32 %v78_v27  ;;  %vm87_vm4 = vmor %vm85_vm3, %vm86_vm2  ;;  %vm95_vm6 = vweird.f32 %v78_v27 }
 0x10a   :  { %v81_v29 = vmul.f32 %v149_v26, %v80_v28 }
 0x10c   :  { %v82_v30 = vmul.f32 0.5, %v81_v29 }
 0x10e   :  { %v83_v31 = vsub.f32 1.5, %v82_v30 }
 0x10f   :  { %v151_v32 = vpop.eup %150 }
 0x110   :  { %v84_v33 = vmul.f32 %v149_v26, %v83_v31  ;;  %v90_v34 = vmul.f32 %v151_v32, %v78_v27  ;;  %vm96_vm5 = vweird.f32 %v151_v32 }
 0x111   :  { %vm97_vm8 = vmor %vm95_vm6, %vm96_vm5 }
 0x112   :  { %v88_v36 = vsel %vm87_vm4, %v149_v26, %v84_v33  ;;  %v91_v37 = vmul.f32 %v151_v32, %v90_v34 }
 0x113   :  { %v99_v39 = vmul.f32 %v88_v36, %v65_v13 }
 0x114   :  { %v92_v40 = vmul.f32 0.5, %v91_v37 }
 0x115   :  { %v104_v41 = vmul.f32 %v144_v35, %v99_v39 }
 0x116   :  { %v93_v42 = vsub.f32 1.5, %v92_v40 }
 0x117   :  { %v109_v43 = vadd.f32 %v145_v38, %v104_v41 }
 0x118   :  { %v94_v44 = vmul.f32 %v151_v32, %v93_v42 }
 0x119   :  { %v111_v45 = vpack.c.bf16 %v109_v43, %v109_v43 }
 0x11a   :  { %v98_v46 = vsel %vm97_vm8, %v151_v32, %v94_v44 }
 0x11b   :  { %v100_v47 = vmul.f32 %v98_v46, %v66_v18  ;;  %114 = vst.msk [vmem:[#allocation7] sm:$0xf] %vm113_vm7, %v111_v45 }
 0x11d   :  { %v105_v48 = vmul.f32 %v144_v35, %v100_v47 }
 0x11f   :  { %v110_v49 = vadd.f32 %v145_v38, %v105_v48 }
 0x121   :  { %v112_v50 = vpack.c.bf16 %v110_v49, %v110_v49 }
 0x123   :  { %115 = vst.msk [vmem:[#allocation7 + $0x4] sm:$0xf] %vm113_vm7, %v112_v50 }
 0x124   :  { %128 = dma.vmem_to_hbm [thread:$0]  %s121_s25, 128, %s123_s2, [#allocation4], %s236_s28, %s236_s28, %s237_s29  }
 0x125   :  { %228 = dma.done.wait [#allocation4], 128  }
 0x126   :  { %229 = vsyncadd [#allocation4], 4294967168 }
 0x127   :  { %133 = vsyncpa [#allocation3], 1 }
 0x128   :  { %134 = vsyncpa [#allocation6], 1 }
 0x129   :  { %135 = vsyncpa [#allocation4], 1 }

</bundles_post_ra>
